<compile_context>
chip_gen: v7x
topology: tpu7x:2x2x1
jax: 0.10.0
libtpu: 0.0.40
codegen_flags: <defaults>
</compile_context>

<pallas_src>
import functools

import jax
import jax.numpy as jnp
from jax import lax
from jax.experimental import pallas as pl
from jax.experimental.pallas import tpu as pltpu


def _round_up(v, m):
    return ((v + m - 1) // m) * m


def _padded_num_nodes(n):
    # Small graphs: pad to sublane multiple (8); large: pad to row-tile multiple (128).
    return _round_up(n, 8) if n <= 128 else _round_up(n, 128)


# --------------------------------------------------------------------------- #
# Fused two-layer GAT kernel
# --------------------------------------------------------------------------- #
def _fused_gat_kernel(x_ref, w0_ref, as0_ref, ad0_ref, b0_ref,
                      w1_ref, as1_ref, ad1_ref, b1_ref, adj_ref,
                      out_ref, h1_ref, z1_ref, h2_ref,
                      *, tm, negative_slope=0.2):
    """Grid = (phase, row_tile). phase 0: GATConv0 + ReLU -> z1 scratch.
    phase 1: GATConv1 on z1 -> output rows."""
    phase = pl.program_id(0)
    r = pl.program_id(1)
    start = pl.multiple_of(r * tm, tm)
    row = pl.ds(start, tm)

    def _attend(h_all_ref, att_src_ref, att_dst_ref, bias_ref):
        h_all = h_all_ref[...]                                   # [Np, C] f32
        h_dst = h_all_ref[row, :]                                # [tm, C] f32
        # Lane-major source logits via MXU contraction (avoids an XLU transpose).
        a_src = lax.dot_general(
            att_src_ref[...], h_all,
            dimension_numbers=(((1,), (1,)), ((), ())),
            preferred_element_type=jnp.float32)                  # [1, Np]
        a_dst = jnp.sum(h_dst * att_dst_ref[...], axis=-1, keepdims=True)  # [tm, 1]
        e = a_dst + a_src                                        # [tm, Np]
        e = jnp.where(e > 0, e, negative_slope * e)              # LeakyReLU(0.2)
        e = e + adj_ref[...].astype(jnp.float32)                 # additive mask (0 / -1e30)
        m = jnp.max(e, axis=-1, keepdims=True)
        pexp = jnp.exp(e - m)
        inv = pl.reciprocal(jnp.sum(pexp, axis=-1, keepdims=True), approx=True)
        alpha = (pexp * inv).astype(jnp.bfloat16)                # [tm, Np]
        agg = jnp.dot(alpha, h_all.astype(jnp.bfloat16),
                      preferred_element_type=jnp.float32)        # [tm, C]
        return agg + bias_ref[...]

    # ---- phase 0: h1 = x @ W0 for ALL nodes (once), then per-tile attention ----
    @pl.when(jnp.logical_and(phase == 0, r == 0))
    def _():
        h1_ref[...] = jnp.dot(x_ref[...], w0_ref[...],
                              preferred_element_type=jnp.float32)

    @pl.when(phase == 0)
    def _():
        z1_ref[row, :] = jnp.maximum(_attend(h1_ref, as0_ref, ad0_ref, b0_ref), 0.0)
        # Keep the output buffer defined during phase 0 (it is rewritten in phase 1).
        out_ref[...] = jnp.zeros_like(out_ref)

    # ---- phase 1: h2 = relu(layer-1 out) @ W1 (once), then per-tile attention ----
    @pl.when(jnp.logical_and(phase == 1, r == 0))
    def _():
        h2_ref[...] = jnp.dot(z1_ref[...].astype(jnp.bfloat16), w1_ref[...],
                              preferred_element_type=jnp.float32)

    @pl.when(phase == 1)
    def _():
        out_ref[...] = _attend(h2_ref, as1_ref, ad1_ref, b1_ref).astype(out_ref.dtype)


# --------------------------------------------------------------------------- #
# Wrapper: padding / BlockSpecs / grid
# --------------------------------------------------------------------------- #
def _pad2(a, rows, cols, dtype=None):
    r, c = a.shape
    out = jnp.zeros((rows, cols), a.dtype if dtype is None else dtype)
    return out.at[:r, :c].set(a.astype(out.dtype))


def gnn_model_forward(x, adj_bias, params):
    """GNNModel.forward: [GATConv, ReLU, Dropout(eval=identity), GATConv]."""
    n, c_in = x.shape
    c_hidden = params["w0"].shape[1]
    c_out = params["w1"].shape[1]

    n_pad = adj_bias.shape[0]
    tm = n_pad if n_pad <= 128 else 128
    assert n_pad % tm == 0
    f_pad = _round_up(c_in, 128)
    ch_pad = _round_up(c_hidden, 128)
    co_pad = _round_up(c_out, 128)

    # Lane-dense padding (zeros do not change the math); bf16 for the MXU streams.
    x_p = _pad2(x, n_pad, f_pad, jnp.bfloat16)
    w0_p = _pad2(params["w0"], f_pad, ch_pad, jnp.bfloat16)
    w1_p = _pad2(params["w1"], ch_pad, co_pad, jnp.bfloat16)
    as0_p = _pad2(params["as0"], 1, ch_pad)
    ad0_p = _pad2(params["ad0"], 1, ch_pad)
    b0_p = _pad2(params["b0"], 1, ch_pad)
    as1_p = _pad2(params["as1"], 1, co_pad)
    ad1_p = _pad2(params["ad1"], 1, co_pad)
    b1_p = _pad2(params["b1"], 1, co_pad)

    kernel = functools.partial(_fused_gat_kernel, tm=tm)
    out_p = pl.pallas_call(
        kernel,
        out_shape=jax.ShapeDtypeStruct((n_pad, co_pad), jnp.float32),
        grid_spec=pltpu.PrefetchScalarGridSpec(
            num_scalar_prefetch=0,
            grid=(2, n_pad // tm),                                  # (phase, row tile)
            in_specs=[
                pl.BlockSpec((n_pad, f_pad), lambda p, r: (0, 0)),   # x
                pl.BlockSpec((f_pad, ch_pad), lambda p, r: (0, 0)),  # W0
                pl.BlockSpec((1, ch_pad), lambda p, r: (0, 0)),      # att_src0
                pl.BlockSpec((1, ch_pad), lambda p, r: (0, 0)),      # att_dst0
                pl.BlockSpec((1, ch_pad), lambda p, r: (0, 0)),      # bias0
                pl.BlockSpec((ch_pad, co_pad), lambda p, r: (0, 0)), # W1
                pl.BlockSpec((1, co_pad), lambda p, r: (0, 0)),      # att_src1
                pl.BlockSpec((1, co_pad), lambda p, r: (0, 0)),      # att_dst1
                pl.BlockSpec((1, co_pad), lambda p, r: (0, 0)),      # bias1
                pl.BlockSpec((tm, n_pad), lambda p, r: (r, 0)),      # adj bias row tile
            ],
            out_specs=pl.BlockSpec((tm, co_pad), lambda p, r: (r, 0)),
            scratch_shapes=[
                pltpu.VMEM((n_pad, ch_pad), jnp.float32),  # h1 = x @ W0   (all nodes)
                pltpu.VMEM((n_pad, ch_pad), jnp.float32),  # z1 = relu(layer-1 out)
                pltpu.VMEM((n_pad, co_pad), jnp.float32),  # h2 = z1 @ W1  (all nodes)
            ]),
        compiler_params=pltpu.CompilerParams(
            # Phase axis and row axis share VMEM scratch across steps -> sequential.
            dimension_semantics=("arbitrary", "arbitrary"),
            vmem_limit_bytes=32 * 1024 * 1024),
    )(x_p, w0_p, as0_p, ad0_p, b0_p, w1_p, as1_p, ad1_p, b1_p, adj_bias)
    return out_p[:n, :c_out]


# --------------------------------------------------------------------------- #
# Graph / parameter construction (outside the per-forward path)
# --------------------------------------------------------------------------- #
def build_adj_bias(edge_index, num_nodes):
    """Additive attention mask: 0 where an edge dst<-src exists (self-loops added,
    matching PyG add_self_loops=True), -1e30 elsewhere. Stored bf16 (halves HBM)."""
    n_pad = _padded_num_nodes(num_nodes)
    src, dst = edge_index[0], edge_index[1]
    adj = jnp.zeros((n_pad, n_pad), jnp.float32)
    adj = adj.at[dst, src].set(1.0)
    # Self-loops on every (incl. padded) node: no all-masked softmax rows -> no NaNs.
    adj = jnp.maximum(adj, jnp.eye(n_pad, dtype=jnp.float32))
    return jnp.where(adj > 0, 0.0, -1e30).astype(jnp.bfloat16)


def init_params(key, c_in, c_hidden, c_out):
    """Deterministic glorot-ish init for two GATConv layers (heads=1)."""
    ks = jax.random.split(key, 8)

    def glorot(k, shape):
        fan_in, fan_out = shape[0], shape[-1]
        lim = (6.0 / (fan_in + fan_out)) ** 0.5
        return jax.random.uniform(k, shape, jnp.float32, -lim, lim)

    return {
        "w0": glorot(ks[0], (c_in, c_hidden)),
        "as0": glorot(ks[1], (1, c_hidden)),
        "ad0": glorot(ks[2], (1, c_hidden)),
        "b0": jnp.zeros((1, c_hidden), jnp.float32),
        "w1": glorot(ks[3], (c_hidden, c_out)),
        "as1": glorot(ks[4], (1, c_out)),
        "ad1": glorot(ks[5], (1, c_out)),
        "b1": jnp.zeros((1, c_out), jnp.float32),
    }


if __name__ == "__main__":
    key = jax.random.PRNGKey(0)
    k_x, k_p = jax.random.split(key)

    # Small synthetic graph: 8 nodes, c_in=16, c_hidden=32, c_out=4.
    N, C_IN, C_HIDDEN, C_OUT = 8, 16, 32, 4
    x = jax.random.normal(k_x, (N, C_IN), jnp.float32)

    # Directed edges (source row, target row) — a ring plus a few chords.
    edge_index = jnp.array(
        [[0, 1, 2, 3, 4, 5, 6, 7, 0, 2, 5, 1],
         [1, 2, 3, 4, 5, 6, 7, 0, 4, 6, 1, 7]], dtype=jnp.int32)

    params = init_params(k_p, C_IN, C_HIDDEN, C_OUT)

    # Static graph: build the dense additive-bias adjacency once, not per forward.
    adj_bias = build_adj_bias(edge_index, N)
    # TODO(synk): nn.Dropout(dp_rate=0.1) is identity in eval mode; omitted.
    # TODO(synk): for large sparse graphs switch to block-sparse adjacency tiles via
    #             PrefetchScalarGridSpec scalar prefetch (skip empty source tiles).

    fwd = jax.jit(gnn_model_forward)
    out = fwd(x, adj_bias, params)
    out = jax.block_until_ready(out)
    assert out.shape == (N, C_OUT), out.shape
    assert bool(jnp.all(jnp.isfinite(out)))
    print("KERNEL_OK")
</pallas_src>

<mosaic_0001>
module attributes {stable_mosaic.version = 11 : i64} {
  func.func @_fused_gat_kernel(%arg0: i32, %arg1: i32, %arg2: memref<8x128xbf16, #tpu.memory_space<vmem>>, %arg3: memref<128x128xbf16, #tpu.memory_space<vmem>>, %arg4: memref<1x128xf32, #tpu.memory_space<vmem>>, %arg5: memref<1x128xf32, #tpu.memory_space<vmem>>, %arg6: memref<1x128xf32, #tpu.memory_space<vmem>>, %arg7: memref<128x128xbf16, #tpu.memory_space<vmem>>, %arg8: memref<1x128xf32, #tpu.memory_space<vmem>>, %arg9: memref<1x128xf32, #tpu.memory_space<vmem>>, %arg10: memref<1x128xf32, #tpu.memory_space<vmem>>, %arg11: memref<8x8xbf16, #tpu.memory_space<vmem>>, %arg12: memref<8x128xf32, #tpu.memory_space<vmem>>, %arg13: memref<8x128xf32, #tpu.memory_space<vmem>>, %arg14: memref<8x128xf32, #tpu.memory_space<vmem>>, %arg15: memref<8x128xf32, #tpu.memory_space<vmem>>) attributes {dimension_semantics = [#tpu.dimension_semantics<arbitrary>, #tpu.dimension_semantics<arbitrary>], iteration_bounds = array<i64: 2, 1>, scalar_prefetch = 0 : i64, scratch_operands = 3 : i64, tpu.core_type = #tpu.core_type<tc>, window_params = [{pipeline_mode = #tpu.pipeline_mode<synchronous>, transform_indices = @transform_0, window_bounds = array<i64: 8, 128>}, {pipeline_mode = #tpu.pipeline_mode<synchronous>, transform_indices = @transform_1, window_bounds = array<i64: 128, 128>}, {pipeline_mode = #tpu.pipeline_mode<synchronous>, transform_indices = @transform_2, window_bounds = array<i64: 1, 128>}, {pipeline_mode = #tpu.pipeline_mode<synchronous>, transform_indices = @transform_3, window_bounds = array<i64: 1, 128>}, {pipeline_mode = #tpu.pipeline_mode<synchronous>, transform_indices = @transform_4, window_bounds = array<i64: 1, 128>}, {pipeline_mode = #tpu.pipeline_mode<synchronous>, transform_indices = @transform_5, window_bounds = array<i64: 128, 128>}, {pipeline_mode = #tpu.pipeline_mode<synchronous>, transform_indices = @transform_6, window_bounds = array<i64: 1, 128>}, {pipeline_mode = #tpu.pipeline_mode<synchronous>, transform_indices = @transform_7, window_bounds = array<i64: 1, 128>}, {pipeline_mode = #tpu.pipeline_mode<synchronous>, transform_indices = @transform_8, window_bounds = array<i64: 1, 128>}, {transform_indices = @transform_9, window_bounds = array<i64: 8, 8>}, {transform_indices = @transform_10, window_bounds = array<i64: 8, 128>}]} {
    %c8_i32 = arith.constant 8 : i32
    %0 = arith.muli %arg1, %c8_i32 : i32
    %1 = tpu.assume_multiple %0, 8 : i32
    %c0_i32 = arith.constant 0 : i32
    %2 = arith.cmpi eq, %arg0, %c0_i32 : i32
    %c0_i32_0 = arith.constant 0 : i32
    %3 = arith.cmpi eq, %arg1, %c0_i32_0 : i32
    %4 = arith.andi %2, %3 : i1
    %5 = arith.extui %4 : i1 to i32
    %c0_i32_1 = arith.constant 0 : i32
    %6 = arith.cmpi ne, %5, %c0_i32_1 : i32
    scf.if %6 {
      %c0 = arith.constant 0 : index
      %c0_8 = arith.constant 0 : index
      %18 = vector.load %arg2[%c0, %c0_8] : memref<8x128xbf16, #tpu.memory_space<vmem>>, vector<8x128xbf16>
      %c0_9 = arith.constant 0 : index
      %c0_10 = arith.constant 0 : index
      %19 = vector.load %arg3[%c0_9, %c0_10] : memref<128x128xbf16, #tpu.memory_space<vmem>>, vector<128x128xbf16>
      %cst = arith.constant dense<0.000000e+00> : vector<8x128xf32>
      %20 = tpu.matmul %18, %19, %cst {dimension_numbers = #tpu.dot_dimension_numbers<[1], [0], [0], [1], [0, 0, 1, 1], [], []>} : vector<8x128xbf16>, vector<128x128xbf16>, vector<8x128xf32> -> vector<8x128xf32>
      %c0_11 = arith.constant 0 : index
      %c0_12 = arith.constant 0 : index
      %21 = vector.load %arg13[%c0_11, %c0_12] : memref<8x128xf32, #tpu.memory_space<vmem>>, vector<8x128xf32>
      tpu.vector_store %arg13[%c0_11, %c0_12], %20 {strides = array<i32>} : memref<8x128xf32, #tpu.memory_space<vmem>>, vector<8x128xf32>,
    } else {
    }
    %c0_i32_2 = arith.constant 0 : i32
    %7 = arith.cmpi eq, %arg0, %c0_i32_2 : i32
    %8 = arith.extui %7 : i1 to i32
    %c0_i32_3 = arith.constant 0 : i32
    %9 = arith.cmpi ne, %8, %c0_i32_3 : i32
    scf.if %9 {
      %c0 = arith.constant 0 : index
      %c0_8 = arith.constant 0 : index
      %18 = vector.load %arg13[%c0, %c0_8] : memref<8x128xf32, #tpu.memory_space<vmem>>, vector<8x128xf32>
      %19 = arith.index_cast %1 : i32 to index
      %c0_9 = arith.constant 0 : index
      %20 = vector.load %arg13[%19, %c0_9] : memref<8x128xf32, #tpu.memory_space<vmem>>, vector<8x128xf32>
      %c0_10 = arith.constant 0 : index
      %c0_11 = arith.constant 0 : index
      %21 = vector.load %arg4[%c0_10, %c0_11] : memref<1x128xf32, #tpu.memory_space<vmem>>, vector<1x128xf32>
      %cst = arith.constant dense<0.000000e+00> : vector<1x8xf32>
      %22 = tpu.matmul %21, %18, %cst {dimension_numbers = #tpu.dot_dimension_numbers<[1], [1], [0], [0], [0, 0, 1, 0], [], []>} : vector<1x128xf32>, vector<8x128xf32>, vector<1x8xf32> -> vector<1x8xf32>
      %c0_12 = arith.constant 0 : index
      %c0_13 = arith.constant 0 : index
      %23 = vector.load %arg5[%c0_12, %c0_13] : memref<1x128xf32, #tpu.memory_space<vmem>>, vector<1x128xf32>
      %24 = vector.broadcast %23 : vector<1x128xf32> to vector<8x128xf32>
      %25 = arith.mulf %20, %24 : vector<8x128xf32>
      %cst_14 = arith.constant dense<0.000000e+00> : vector<8xf32>
      %26 = vector.multi_reduction <add>, %25, %cst_14 [1] : vector<8x128xf32> to vector<8xf32>
      %27 = vector.shape_cast %26 : vector<8xf32> to vector<8x1xf32>
      %28 = vector.broadcast %27 : vector<8x1xf32> to vector<8x8xf32>
      %29 = vector.broadcast %22 : vector<1x8xf32> to vector<8x8xf32>
      %30 = arith.addf %28, %29 : vector<8x8xf32>
      %cst_15 = arith.constant 0.000000e+00 : f32
      %31 = vector.broadcast %cst_15 : f32 to vector<8x8xf32>
      %32 = arith.cmpf ogt, %30, %31 : vector<8x8xf32>
      %cst_16 = arith.constant 2.000000e-01 : f32
      %33 = vector.broadcast %cst_16 : f32 to vector<8x8xf32>
      %34 = arith.mulf %33, %30 : vector<8x8xf32>
      %35 = arith.select %32, %30, %34 : vector<8x8xi1>, vector<8x8xf32>
      %c0_17 = arith.constant 0 : index
      %c0_18 = arith.constant 0 : index
      %36 = vector.load %arg11[%c0_17, %c0_18] : memref<8x8xbf16, #tpu.memory_space<vmem>>, vector<8x8xbf16>
      %37 = arith.extf %36 : vector<8x8xbf16> to vector<8x8xf32>
      %38 = arith.addf %35, %37 : vector<8x8xf32>
      %cst_19 = arith.constant dense<0xFF800000> : vector<8xf32>
      %39 = vector.multi_reduction <maximumf>, %38, %cst_19 [1] : vector<8x8xf32> to vector<8xf32>
      %40 = vector.shape_cast %39 : vector<8xf32> to vector<8x1xf32>
      %41 = vector.broadcast %40 : vector<8x1xf32> to vector<8x8xf32>
      %42 = arith.subf %38, %41 : vector<8x8xf32>
      %43 = math.exp %42 : vector<8x8xf32>
      %cst_20 = arith.constant dense<0.000000e+00> : vector<8xf32>
      %44 = vector.multi_reduction <add>, %43, %cst_20 [1] : vector<8x8xf32> to vector<8xf32>
      %45 = vector.shape_cast %44 : vector<8xf32> to vector<8x1xf32>
      %46 = tpu.reciprocal %45 {approx = true} : vector<8x1xf32> -> vector<8x1xf32>
      %47 = vector.broadcast %46 : vector<8x1xf32> to vector<8x8xf32>
      %48 = arith.mulf %43, %47 : vector<8x8xf32>
      %49 = arith.truncf %48 : vector<8x8xf32> to vector<8x8xbf16>
      %50 = arith.truncf %18 : vector<8x128xf32> to vector<8x128xbf16>
      %cst_21 = arith.constant dense<0.000000e+00> : vector<8x128xf32>
      %51 = tpu.matmul %49, %50, %cst_21 {dimension_numbers = #tpu.dot_dimension_numbers<[1], [0], [0], [1], [0, 0, 1, 1], [], []>} : vector<8x8xbf16>, vector<8x128xbf16>, vector<8x128xf32> -> vector<8x128xf32>
      %c0_22 = arith.constant 0 : index
      %c0_23 = arith.constant 0 : index
      %52 = vector.load %arg6[%c0_22, %c0_23] : memref<1x128xf32, #tpu.memory_space<vmem>>, vector<1x128xf32>
      %53 = vector.broadcast %52 : vector<1x128xf32> to vector<8x128xf32>
      %54 = arith.addf %51, %53 : vector<8x128xf32>
      %cst_24 = arith.constant 0.000000e+00 : f32
      %55 = vector.broadcast %cst_24 : f32 to vector<8x128xf32>
      %56 = arith.maximumf %54, %55 : vector<8x128xf32>
      %57 = arith.index_cast %1 : i32 to index
      %c0_25 = arith.constant 0 : index
      %58 = vector.load %arg14[%57, %c0_25] : memref<8x128xf32, #tpu.memory_space<vmem>>, vector<8x128xf32>
      tpu.vector_store %arg14[%57, %c0_25], %56 {strides = array<i32>} : memref<8x128xf32, #tpu.memory_space<vmem>>, vector<8x128xf32>,
      %cst_26 = arith.constant 0.000000e+00 : f32
      %59 = vector.broadcast %cst_26 : f32 to vector<8x128xf32>
      %c0_27 = arith.constant 0 : index
      %c0_28 = arith.constant 0 : index
      %60 = vector.load %arg12[%c0_27, %c0_28] : memref<8x128xf32, #tpu.memory_space<vmem>>, vector<8x128xf32>
      tpu.vector_store %arg12[%c0_27, %c0_28], %59 {strides = array<i32>} : memref<8x128xf32, #tpu.memory_space<vmem>>, vector<8x128xf32>,
    } else {
    }
    %c1_i32 = arith.constant 1 : i32
    %10 = arith.cmpi eq, %arg0, %c1_i32 : i32
    %c0_i32_4 = arith.constant 0 : i32
    %11 = arith.cmpi eq, %arg1, %c0_i32_4 : i32
    %12 = arith.andi %10, %11 : i1
    %13 = arith.extui %12 : i1 to i32
    %c0_i32_5 = arith.constant 0 : i32
    %14 = arith.cmpi ne, %13, %c0_i32_5 : i32
    scf.if %14 {
      %c0 = arith.constant 0 : index
      %c0_8 = arith.constant 0 : index
      %18 = vector.load %arg14[%c0, %c0_8] : memref<8x128xf32, #tpu.memory_space<vmem>>, vector<8x128xf32>
      %19 = arith.truncf %18 : vector<8x128xf32> to vector<8x128xbf16>
      %c0_9 = arith.constant 0 : index
      %c0_10 = arith.constant 0 : index
      %20 = vector.load %arg7[%c0_9, %c0_10] : memref<128x128xbf16, #tpu.memory_space<vmem>>, vector<128x128xbf16>
      %cst = arith.constant dense<0.000000e+00> : vector<8x128xf32>
      %21 = tpu.matmul %19, %20, %cst {dimension_numbers = #tpu.dot_dimension_numbers<[1], [0], [0], [1], [0, 0, 1, 1], [], []>} : vector<8x128xbf16>, vector<128x128xbf16>, vector<8x128xf32> -> vector<8x128xf32>
      %c0_11 = arith.constant 0 : index
      %c0_12 = arith.constant 0 : index
      %22 = vector.load %arg15[%c0_11, %c0_12] : memref<8x128xf32, #tpu.memory_space<vmem>>, vector<8x128xf32>
      tpu.vector_store %arg15[%c0_11, %c0_12], %21 {strides = array<i32>} : memref<8x128xf32, #tpu.memory_space<vmem>>, vector<8x128xf32>,
    } else {
    }
    %c1_i32_6 = arith.constant 1 : i32
    %15 = arith.cmpi eq, %arg0, %c1_i32_6 : i32
    %16 = arith.extui %15 : i1 to i32
    %c0_i32_7 = arith.constant 0 : i32
    %17 = arith.cmpi ne, %16, %c0_i32_7 : i32
    scf.if %17 {
      %c0 = arith.constant 0 : index
      %c0_8 = arith.constant 0 : index
      %18 = vector.load %arg15[%c0, %c0_8] : memref<8x128xf32, #tpu.memory_space<vmem>>, vector<8x128xf32>
      %19 = arith.index_cast %1 : i32 to index
      %c0_9 = arith.constant 0 : index
      %20 = vector.load %arg15[%19, %c0_9] : memref<8x128xf32, #tpu.memory_space<vmem>>, vector<8x128xf32>
      %c0_10 = arith.constant 0 : index
      %c0_11 = arith.constant 0 : index
      %21 = vector.load %arg8[%c0_10, %c0_11] : memref<1x128xf32, #tpu.memory_space<vmem>>, vector<1x128xf32>
      %cst = arith.constant dense<0.000000e+00> : vector<1x8xf32>
      %22 = tpu.matmul %21, %18, %cst {dimension_numbers = #tpu.dot_dimension_numbers<[1], [1], [0], [0], [0, 0, 1, 0], [], []>} : vector<1x128xf32>, vector<8x128xf32>, vector<1x8xf32> -> vector<1x8xf32>
      %c0_12 = arith.constant 0 : index
      %c0_13 = arith.constant 0 : index
      %23 = vector.load %arg9[%c0_12, %c0_13] : memref<1x128xf32, #tpu.memory_space<vmem>>, vector<1x128xf32>
      %24 = vector.broadcast %23 : vector<1x128xf32> to vector<8x128xf32>
      %25 = arith.mulf %20, %24 : vector<8x128xf32>
      %cst_14 = arith.constant dense<0.000000e+00> : vector<8xf32>
      %26 = vector.multi_reduction <add>, %25, %cst_14 [1] : vector<8x128xf32> to vector<8xf32>
      %27 = vector.shape_cast %26 : vector<8xf32> to vector<8x1xf32>
      %28 = vector.broadcast %27 : vector<8x1xf32> to vector<8x8xf32>
      %29 = vector.broadcast %22 : vector<1x8xf32> to vector<8x8xf32>
      %30 = arith.addf %28, %29 : vector<8x8xf32>
      %cst_15 = arith.constant 0.000000e+00 : f32
      %31 = vector.broadcast %cst_15 : f32 to vector<8x8xf32>
      %32 = arith.cmpf ogt, %30, %31 : vector<8x8xf32>
      %cst_16 = arith.constant 2.000000e-01 : f32
      %33 = vector.broadcast %cst_16 : f32 to vector<8x8xf32>
      %34 = arith.mulf %33, %30 : vector<8x8xf32>
      %35 = arith.select %32, %30, %34 : vector<8x8xi1>, vector<8x8xf32>
      %c0_17 = arith.constant 0 : index
      %c0_18 = arith.constant 0 : index
      %36 = vector.load %arg11[%c0_17, %c0_18] : memref<8x8xbf16, #tpu.memory_space<vmem>>, vector<8x8xbf16>
      %37 = arith.extf %36 : vector<8x8xbf16> to vector<8x8xf32>
      %38 = arith.addf %35, %37 : vector<8x8xf32>
      %cst_19 = arith.constant dense<0xFF800000> : vector<8xf32>
      %39 = vector.multi_reduction <maximumf>, %38, %cst_19 [1] : vector<8x8xf32> to vector<8xf32>
      %40 = vector.shape_cast %39 : vector<8xf32> to vector<8x1xf32>
      %41 = vector.broadcast %40 : vector<8x1xf32> to vector<8x8xf32>
      %42 = arith.subf %38, %41 : vector<8x8xf32>
      %43 = math.exp %42 : vector<8x8xf32>
      %cst_20 = arith.constant dense<0.000000e+00> : vector<8xf32>
      %44 = vector.multi_reduction <add>, %43, %cst_20 [1] : vector<8x8xf32> to vector<8xf32>
      %45 = vector.shape_cast %44 : vector<8xf32> to vector<8x1xf32>
      %46 = tpu.reciprocal %45 {approx = true} : vector<8x1xf32> -> vector<8x1xf32>
      %47 = vector.broadcast %46 : vector<8x1xf32> to vector<8x8xf32>
      %48 = arith.mulf %43, %47 : vector<8x8xf32>
      %49 = arith.truncf %48 : vector<8x8xf32> to vector<8x8xbf16>
      %50 = arith.truncf %18 : vector<8x128xf32> to vector<8x128xbf16>
      %cst_21 = arith.constant dense<0.000000e+00> : vector<8x128xf32>
      %51 = tpu.matmul %49, %50, %cst_21 {dimension_numbers = #tpu.dot_dimension_numbers<[1], [0], [0], [1], [0, 0, 1, 1], [], []>} : vector<8x8xbf16>, vector<8x128xbf16>, vector<8x128xf32> -> vector<8x128xf32>
      %c0_22 = arith.constant 0 : index
      %c0_23 = arith.constant 0 : index
      %52 = vector.load %arg10[%c0_22, %c0_23] : memref<1x128xf32, #tpu.memory_space<vmem>>, vector<1x128xf32>
      %53 = vector.broadcast %52 : vector<1x128xf32> to vector<8x128xf32>
      %54 = arith.addf %51, %53 : vector<8x128xf32>
      %c0_24 = arith.constant 0 : index
      %c0_25 = arith.constant 0 : index
      %55 = vector.load %arg12[%c0_24, %c0_25] : memref<8x128xf32, #tpu.memory_space<vmem>>, vector<8x128xf32>
      tpu.vector_store %arg12[%c0_24, %c0_25], %54 {strides = array<i32>} : memref<8x128xf32, #tpu.memory_space<vmem>>, vector<8x128xf32>,
    } else {
    }
    return
  }
  func.func @transform_0(%arg0: i32, %arg1: i32) -> (i32, i32) {
    %c0_i32 = arith.constant 0 : i32
    %c0_i32_0 = arith.constant 0 : i32
    %c0_i32_1 = arith.constant 0 : i32
    return %c0_i32, %c0_i32_0 : i32, i32
  }
  func.func @transform_1(%arg0: i32, %arg1: i32) -> (i32, i32) {
    %c0_i32 = arith.constant 0 : i32
    %c0_i32_0 = arith.constant 0 : i32
    %c0_i32_1 = arith.constant 0 : i32
    return %c0_i32, %c0_i32_0 : i32, i32
  }
  func.func @transform_2(%arg0: i32, %arg1: i32) -> (i32, i32) {
    %c0_i32 = arith.constant 0 : i32
    %c0_i32_0 = arith.constant 0 : i32
    %c0_i32_1 = arith.constant 0 : i32
    return %c0_i32, %c0_i32_0 : i32, i32
  }
  func.func @transform_3(%arg0: i32, %arg1: i32) -> (i32, i32) {
    %c0_i32 = arith.constant 0 : i32
    %c0_i32_0 = arith.constant 0 : i32
    %c0_i32_1 = arith.constant 0 : i32
    return %c0_i32, %c0_i32_0 : i32, i32
  }
  func.func @transform_4(%arg0: i32, %arg1: i32) -> (i32, i32) {
    %c0_i32 = arith.constant 0 : i32
    %c0_i32_0 = arith.constant 0 : i32
    %c0_i32_1 = arith.constant 0 : i32
    return %c0_i32, %c0_i32_0 : i32, i32
  }
  func.func @transform_5(%arg0: i32, %arg1: i32) -> (i32, i32) {
    %c0_i32 = arith.constant 0 : i32
    %c0_i32_0 = arith.constant 0 : i32
    %c0_i32_1 = arith.constant 0 : i32
    return %c0_i32, %c0_i32_0 : i32, i32
  }
  func.func @transform_6(%arg0: i32, %arg1: i32) -> (i32, i32) {
    %c0_i32 = arith.constant 0 : i32
    %c0_i32_0 = arith.constant 0 : i32
    %c0_i32_1 = arith.constant 0 : i32
    return %c0_i32, %c0_i32_0 : i32, i32
  }
  func.func @transform_7(%arg0: i32, %arg1: i32) -> (i32, i32) {
    %c0_i32 = arith.constant 0 : i32
    %c0_i32_0 = arith.constant 0 : i32
    %c0_i32_1 = arith.constant 0 : i32
    return %c0_i32, %c0_i32_0 : i32, i32
  }
  func.func @transform_8(%arg0: i32, %arg1: i32) -> (i32, i32) {
    %c0_i32 = arith.constant 0 : i32
    %c0_i32_0 = arith.constant 0 : i32
    %c0_i32_1 = arith.constant 0 : i32
    return %c0_i32, %c0_i32_0 : i32, i32
  }
  func.func @transform_9(%arg0: i32, %arg1: i32) -> (i32, i32) {
    %c0_i32 = arith.constant 0 : i32
    %c0_i32_0 = arith.constant 0 : i32
    return %arg1, %c0_i32 : i32, i32
  }
  func.func @transform_10(%arg0: i32, %arg1: i32) -> (i32, i32) {
    %c0_i32 = arith.constant 0 : i32
    %c0_i32_0 = arith.constant 0 : i32
    return %arg1, %c0_i32 : i32, i32
  }
}

</mosaic_0001>

<bundles_post_ra>
// kernel: gnn_model_forward.1
= control target key start
LH: loop header
LB: loop body
LE: loop exit
PB: predicated region body
PF: predicated region fallthrough
CT: control target
= control target key end

     0   :  { %s1264_s13 = smov 0   ;;  %s1266_s14 = smov 0   ;;  %s1384_s0 = inlined_call_operand.vmem [shape: bf16[8,128], index: 0, kind: input, shape index: {}]   ;;  %s1385_s1 = inlined_call_operand.vmem [shape: bf16[128,128], index: 1, kind: input, shape index: {}]   ;;  %s1386_s2 = inlined_call_operand.vmem [shape: f32[1,128], index: 2, kind: input, shape index: {}]   ;;  %s1387_s3 = inlined_call_operand.vmem [shape: f32[1,128], index: 3, kind: input, shape index: {}]   ;;  %s1388_s4 = inlined_call_operand.vmem [shape: f32[1,128], index: 4, kind: input, shape index: {}]   ;;  %s1389_s5 = inlined_call_operand.vmem [shape: bf16[128,128], index: 5, kind: input, shape index: {}]   ;;  %s1390_s6 = inlined_call_operand.vmem [shape: f32[1,128], index: 6, kind: input, shape index: {}]   ;;  %s1391_s7 = inlined_call_operand.vmem [shape: f32[1,128], index: 7, kind: input, shape index: {}]   ;;  %s1392_s8 = inlined_call_operand.vmem [shape: f32[1,128], index: 8, kind: input, shape index: {}]   ;;  %s1393_s9 = inlined_call_operand.vmem [shape: bf16[8,8], index: 9, kind: input, shape index: {}]   ;;  %s1394_s10 = inlined_call_operand.vmem [shape: f32[8,128], index: 10, kind: output, shape index: {}]  }
   0x1   :  { %s1268_s15 = smov 0  }
   0x2 LB: > { %s32_s16 = sadd.s32 1, %s1195_s14  ;;  %p1001_p0 = scmp.ge.s32.totalorder %s1199_s15, 1  ;;  %s1199_s15 = sphi %s1268_s15, %s20_s15   ;;  %s1195_s14 = sphi %s1266_s14, %s1396_s14   ;;  %s1191_s13 = sphi %s1264_s13, %s1395_s13  }
   0x3   : > { %p34_p1 = scmp.ge.s32.totalorder %s32_s16, 2  ;;  %p323_p2 = scmp.lt.s32.totalorder %s1199_s15, 3 }
   0x5   : > { %s1398_s16 = smov (%p34_p1, %s32_s16), 0  ;;  %p324_p3 = pnand %p1001_p0, %p323_p2 }
   0x6   : > { %p369_p4 = scmp.eq.s32.totalorder (!%p324_p3), %s1191_s13, 0 }
   0x7   : > { %327 = sbr.rel (%p324_p3) target bundleno = 2033 (0x7f1), region = 60 }
   0xe   : > { %374 = sbr.rel (!%p369_p4) target bundleno = 262 (0x106), region = 64  ;;  %v1153_v0 = vld [vmem:[%s1385_s1] sm:$0xff] (%p369_p4)   ;;  %v1201_v1 = vmov (%p369_p4), 0.0   ;;  %v1154_v2 = vld [vmem:[%s1385_s1 + $0x8] sm:$0xff] (%p369_p4)   ;;  %vm1202_vm0 = vmmov (%p369_p4), 0   ;;  %v1155_v3 = vld [vmem:[%s1385_s1 + $0x10] sm:$0xff] (%p369_p4)  }
   0xf   : > { %1059 = vmatprep.subr.bf16.mxu0 (%p369_p4), %v1201_v1  ;;  %1075 = vmatprep.mubr.msk.bf16.mxu0 (%p369_p4), %vm1202_vm0, %v1201_v1  ;;  %v1156_v4 = vld [vmem:[%s1385_s1 + $0x18] sm:$0xff] (%p369_p4)   ;;  %v1157_v5 = vld [vmem:[%s1385_s1 + $0x20] sm:$0xff] (%p369_p4)   ;;  %v1158_v6 = vld [vmem:[%s1385_s1 + $0x28] sm:$0xff] (%p369_p4)  }
  0x10   : > { %1060 = vmatpush3.bf16.msra.mxu0 (%p369_p4), %v1153_v0  ;;  %v1159_v7 = vld [vmem:[%s1385_s1 + $0x30] sm:$0xff] (%p369_p4)   ;;  %v1160_v8 = vld [vmem:[%s1385_s1 + $0x38] sm:$0xff] (%p369_p4)   ;;  %v375_v9 = vld [vmem:[%s1384_s0] sm:$0xf] (%p369_p4) }
  0x11   : > { %1061 = vmatprep.subr.bf16.mxu0 (%p369_p4), %v1201_v1 }
  0x14   : > { %1062 = vmatpush3.bf16.msra.mxu0 (%p369_p4), %v1154_v2 }
  0x15   : > { %1063 = vmatprep.subr.bf16.mxu0 %v1201_v1 }
  0x18   : > { %1064 = vmatpush3.bf16.msra.mxu0 %v1155_v3 }
  0x19   : > { %1065 = vmatprep.subr.bf16.mxu0 %v1201_v1 }
  0x1c   : > { %1066 = vmatpush3.bf16.msra.mxu0 %v1156_v4 }
  0x1d   : > { %1067 = vmatprep.subr.bf16.mxu0 %v1201_v1 }
  0x20   : > { %1068 = vmatpush3.bf16.msra.mxu0 %v1157_v5 }
  0x21   : > { %1069 = vmatprep.subr.bf16.mxu0 %v1201_v1 }
  0x24   : > { %1070 = vmatpush3.bf16.msra.mxu0 %v1158_v6 }
  0x25   : > { %1071 = vmatprep.subr.bf16.mxu0 %v1201_v1 }
  0x28   : > { %1072 = vmatpush3.bf16.msra.mxu0 %v1159_v7 }
  0x29   : > { %1073 = vmatprep.subr.bf16.mxu0 %v1201_v1 }
  0x2c   : > { %1074 = vmatpush3.bf16.msra.mxu0 %v1160_v8 }
  0x2f   : > { %1076 = vmatmul.mubr.bf16.vlgmr.msra.gmra.mrb[0].mxu0 %v375_v9 }
 0x102   : > { %v474_v10 = vpop.f32.mrb[0].mxu0 }
 0x103   : > { %480 = vst [vmem:[#allocation2] sm:$0xff] %v474_v10  ;;  %v1077_v11 = vpop.f32.mrb[1].mxu0 }
 0x104   : > { %v477_v12 = vpop.f32.mrb[2].mxu0 }
 0x105   : > { %v1078_v13 = vpop.f32.mrb[3].mxu0 }
 0x106 PF: > { %p1011_p5 = scmp.ne.s32.totalorder %s1191_s13, 0 }
 0x107   : > { %v1203_v15 = vmov (!%p1011_p5), 0.0   ;;  %vm1204_vm1 = vmmov (!%p1011_p5), 0   ;;  %v1012_v16 = vld [vmem:[%s1387_s3] ss:$0 sm:$0xff] (!%p1011_p5)  ;;  %v568_v19 = vlaneseq (!%p1011_p5)  ;;  %vm579_vm3 = vcmask (!%p1011_p5), 64512  }
 0x108   : > { %483 = sbr.rel (%p1011_p5) target bundleno = 1024 (0x400), region = 68  ;;  %1079 = vmatprep.subr.mxu0 (!%p1011_p5), %v1203_v15  ;;  %650 = vst [vmem:[%s1394_s10] sm:$0xff] (!%p1011_p5), %v1203_v15  ;;  %1081 = vmatprep.mubr.msk.f32.mxu0 (!%p1011_p5), %vm1204_vm1, %v1203_v15  ;;  %v487_v17 = vld [vmem:[%s1386_s2] sm:$0x1] (!%p1011_p5)  ;;  %vm603_vm4 = vcmask (!%p1011_p5), 1043456  }
 0x109   : > { %1084 = vmatprep.subr.bf16.mxu1 (!%p1011_p5), %v1203_v15  ;;  %1086 = vmatprep.mubr.msk.bf16.mxu1 (!%p1011_p5), %vm1204_vm1, %v1203_v15  ;;  %v569_v20 = vshrl.u32 (!%p1011_p5), %v568_v19, 7  ;;  %v576_v26 = vld [vmem:[%s1393_s9] sm:$0xf] (!%p1011_p5) }
 0x10a   : > { %v484_v14 = vld [vmem:[#allocation2] sm:$0xff] (!%p1011_p5)  ;;  %v577_v28 = vunpack.c.l.bf16 (!%p1011_p5), %v576_v26 }
 0x10b   : > { %1080 = vmatpush3.xpose.msra.mxu0 (!%p1011_p5), %v484_v14  ;;  %v565_v18 = vmul.f32 (!%p1011_p5), %v1012_v16, %v484_v14  ;;  %v570_v21 = vsub.s32 (!%p1011_p5), 0, %v569_v20  ;;  %v592_v38 = vpack.c.bf16 (!%p1011_p5), %v484_v14, %v484_v14  ;;  %v1013_v44 = vld [vmem:[%s1388_s4] ss:$0 sm:$0xff] (!%p1011_p5) }
 0x10d   : > { %566 = vadd.xlane.f32.xlu0 (!%p1011_p5), %v565_v18  ;;  %v605_v39 = vsel (!%p1011_p5), %vm603_vm4, %v592_v38, 0 }
 0x10e   : > { %1082 = vmatmul.mubr.f32.vlgmr.msra.gmra.mrb[0].mxu0 (!%p1011_p5), %v487_v17  ;;  %1085 = vmatpush3.bf16.msra.mxu1 (!%p1011_p5), %v605_v39 }
 0x19a   : > { %v567_v23 = vpop.xlane.xlu0 %566 }
 0x1e1   : > { %v554_v22 = vpop.f32.mrb[0].mxu0 }
 0x1e2   : > { %v571_v24 = vrot.slane %v554_v22, %v570_v21  ;;  %v1083_v25 = vpop.f32.mrb[1].mxu0 }
 0x1e4   : > { %v572_v27 = vadd.f32 %v571_v24, %v567_v23 }
 0x1e6   : > { %vm573_vm2 = vcmp.gt.f32.partialorder %v572_v27, 0.0  ;;  %v574_v29 = vmul.f32 0.2, %v572_v27 }
 0x1e8   : > { %v575_v30 = vsel %vm573_vm2, %v572_v27, %v574_v29 }
 0x1e9   : > { %v578_v31 = vadd.f32 %v577_v28, %v575_v30 }
 0x1eb   : > { %v580_v32 = vsel %vm579_vm3, %v578_v31, -inf }
 0x1ec   : > { %581 = vmax.xlane.f32.xlu0 %v580_v32 }
 0x279   : > { %v582_v33 = vpop.xlane.xlu0 %581 }
 0x27a   : > { %v583_v34 = vsub.f32 %v578_v31, %v582_v33 }
 0x27c   : > { %v584_v35 = vmul.f32 1.442695, %v583_v34 }
 0x27e   : > { %1161 = vpow2.f32 %v584_v35 }
 0x288   : > { %v1162_v36 = vpop.eup %1161 }
 0x289   : > { %v586_v37 = vsel %vm579_vm3, %v1162_v36, 0.0 }
 0x28a   : > { %587 = vadd.xlane.f32.xlu1 %v586_v37 }
 0x317   : > { %v588_v40 = vpop.xlane.xlu1 %587 }
 0x318   : > { %1163 = vrcp.f32 %v588_v40 }
 0x322   : > { %v1164_v41 = vpop.eup %1163 }
 0x323   : > { %v590_v42 = vmul.f32 %v1164_v41, %v1162_v36 }
 0x325   : > { %v591_v43 = vpack.c.bf16 %v590_v42, %v590_v42 }
 0x327   : > { %1087 = vmatmul.mubr.msk.bf16.vlgmr.msra.gmra.mrb[0].mxu1 %vm579_vm3, %v591_v43 }
 0x3fa   : > { %v641_v45 = vpop.f32.mrb[0].mxu1 }
 0x3fb   : > { %v642_v46 = vadd.f32 %v1013_v44, %v641_v45  ;;  %v1088_v47 = vpop.f32.mrb[1].mxu1 }
 0x3fc   : > { %v644_v48 = vpop.f32.mrb[2].mxu1 }
 0x3fd   : > { %v647_v49 = vmax.f32 %v642_v46, 0.0  ;;  %v1089_v50 = vpop.f32.mrb[3].mxu1 }
 0x3ff   : > { %649 = vst [vmem:[#allocation3] sm:$0xff] %v647_v49 }
 0x400 PF: > { %p651_p6 = scmp.eq.s32.totalorder %s1191_s13, 1 }
 0x401   : > { %v1165_v51 = vld [vmem:[%s1389_s5] sm:$0xff] (%p651_p6)   ;;  %v1205_v52 = vmov (%p651_p6), 0.0   ;;  %v1166_v53 = vld [vmem:[%s1389_s5 + $0x8] sm:$0xff] (%p651_p6)   ;;  %vm1206_vm5 = vmmov (%p651_p6), 0   ;;  %v1167_v54 = vld [vmem:[%s1389_s5 + $0x10] sm:$0xff] (%p651_p6)  }
 0x402   : > { %655 = sbr.rel (!%p651_p6) target bundleno = 1273 (0x4f9), region = 72  ;;  %1090 = vmatprep.subr.bf16.mxu0 (%p651_p6), %v1205_v52  ;;  %1106 = vmatprep.mubr.msk.bf16.mxu0 (%p651_p6), %vm1206_vm5, %v1205_v52  ;;  %v1168_v55 = vld [vmem:[%s1389_s5 + $0x18] sm:$0xff] (%p651_p6)   ;;  %v1169_v56 = vld [vmem:[%s1389_s5 + $0x20] sm:$0xff] (%p651_p6)   ;;  %v1170_v57 = vld [vmem:[%s1389_s5 + $0x28] sm:$0xff] (%p651_p6)  }
 0x403   : > { %1091 = vmatpush3.bf16.msra.mxu0 (%p651_p6), %v1165_v51  ;;  %v1171_v58 = vld [vmem:[%s1389_s5 + $0x30] sm:$0xff] (%p651_p6)   ;;  %v1172_v59 = vld [vmem:[%s1389_s5 + $0x38] sm:$0xff] (%p651_p6)  }
 0x404   : > { %1092 = vmatprep.subr.bf16.mxu0 (%p651_p6), %v1205_v52 }
 0x406   : > { %v656_v60 = vld [vmem:[#allocation3] sm:$0xff] (%p651_p6) }
 0x407   : > { %1093 = vmatpush3.bf16.msra.mxu0 (%p651_p6), %v1166_v53  ;;  %v657_v61 = vpack.c.bf16 (%p651_p6), %v656_v60, %v656_v60 }
 0x408   : > { %1094 = vmatprep.subr.bf16.mxu0 (%p651_p6), %v1205_v52 }
 0x40b   : > { %1095 = vmatpush3.bf16.msra.mxu0 %v1167_v54 }
 0x40c   : > { %1096 = vmatprep.subr.bf16.mxu0 %v1205_v52 }
 0x40f   : > { %1097 = vmatpush3.bf16.msra.mxu0 %v1168_v55 }
 0x410   : > { %1098 = vmatprep.subr.bf16.mxu0 %v1205_v52 }
 0x413   : > { %1099 = vmatpush3.bf16.msra.mxu0 %v1169_v56 }
 0x414   : > { %1100 = vmatprep.subr.bf16.mxu0 %v1205_v52 }
 0x417   : > { %1101 = vmatpush3.bf16.msra.mxu0 %v1170_v57 }
 0x418   : > { %1102 = vmatprep.subr.bf16.mxu0 %v1205_v52 }
 0x41b   : > { %1103 = vmatpush3.bf16.msra.mxu0 %v1171_v58 }
 0x41c   : > { %1104 = vmatprep.subr.bf16.mxu0 %v1205_v52 }
 0x41f   : > { %1105 = vmatpush3.bf16.msra.mxu0 %v1172_v59 }
 0x422   : > { %1107 = vmatmul.mubr.bf16.vlgmr.msra.gmra.mrb[0].mxu0 %v657_v61 }
 0x4f5   : > { %v756_v62 = vpop.f32.mrb[0].mxu0 }
 0x4f6   : > { %762 = vst [vmem:[#allocation4] sm:$0xff] %v756_v62  ;;  %v1108_v63 = vpop.f32.mrb[1].mxu0 }
 0x4f7   : > { %v759_v0 = vpop.f32.mrb[2].mxu0 }
 0x4f8   : > { %v1109_v1 = vpop.f32.mrb[3].mxu0 }
 0x4f9 PF: > { %p1024_p7 = scmp.ne.s32.totalorder %s1191_s13, 1 }
 0x4fa   : > { %v1207_v3 = vmov (!%p1024_p7), 0.0   ;;  %vm1208_vm6 = vmmov (!%p1024_p7), 0   ;;  %v1025_v4 = vld [vmem:[%s1391_s7] ss:$0 sm:$0xff] (!%p1024_p7)  ;;  %v850_v7 = vlaneseq (!%p1024_p7)  ;;  %vm861_vm8 = vcmask (!%p1024_p7), 64512  }
 0x4fb   : > { %765 = sbr.rel (%p1024_p7) target bundleno = 2033 (0x7f1), region = 76  ;;  %1110 = vmatprep.subr.mxu0 (!%p1024_p7), %v1207_v3  ;;  %1112 = vmatprep.mubr.msk.f32.mxu0 (!%p1024_p7), %vm1208_vm6, %v1207_v3  ;;  %v769_v5 = vld [vmem:[%s1390_s6] sm:$0x1] (!%p1024_p7)  ;;  %vm885_vm9 = vcmask (!%p1024_p7), 1043456  }
 0x4fc   : > { %1115 = vmatprep.subr.bf16.mxu1 (!%p1024_p7), %v1207_v3  ;;  %1117 = vmatprep.mubr.msk.bf16.mxu1 (!%p1024_p7), %vm1208_vm6, %v1207_v3  ;;  %v851_v8 = vshrl.u32 (!%p1024_p7), %v850_v7, 7  ;;  %v858_v14 = vld [vmem:[%s1393_s9] sm:$0xf] (!%p1024_p7) }
 0x4fd   : > { %v766_v2 = vld [vmem:[#allocation4] sm:$0xff] (!%p1024_p7)  ;;  %v859_v16 = vunpack.c.l.bf16 (!%p1024_p7), %v858_v14  ;;  %v1026_v32 = vld [vmem:[%s1392_s8] ss:$0 sm:$0xff] (!%p1024_p7) }
 0x4fe   : > { %1111 = vmatpush3.xpose.msra.mxu0 (!%p1024_p7), %v766_v2  ;;  %v847_v6 = vmul.f32 (!%p1024_p7), %v1025_v4, %v766_v2  ;;  %v852_v9 = vsub.s32 (!%p1024_p7), 0, %v851_v8  ;;  %v874_v26 = vpack.c.bf16 (!%p1024_p7), %v766_v2, %v766_v2 }
 0x500   : > { %848 = vadd.xlane.f32.xlu0 (!%p1024_p7), %v847_v6  ;;  %v887_v27 = vsel (!%p1024_p7), %vm885_vm9, %v874_v26, 0 }
 0x501   : > { %1113 = vmatmul.mubr.f32.vlgmr.msra.gmra.mrb[0].mxu0 (!%p1024_p7), %v769_v5  ;;  %1116 = vmatpush3.bf16.msra.mxu1 (!%p1024_p7), %v887_v27 }
 0x58d   : > { %v849_v11 = vpop.xlane.xlu0 %848 }
 0x5d4   : > { %v836_v10 = vpop.f32.mrb[0].mxu0 }
 0x5d5   : > { %v853_v12 = vrot.slane %v836_v10, %v852_v9  ;;  %v1114_v13 = vpop.f32.mrb[1].mxu0 }
 0x5d7   : > { %v854_v15 = vadd.f32 %v853_v12, %v849_v11 }
 0x5d9   : > { %vm855_vm7 = vcmp.gt.f32.partialorder %v854_v15, 0.0  ;;  %v856_v17 = vmul.f32 0.2, %v854_v15 }
 0x5db   : > { %v857_v18 = vsel %vm855_vm7, %v854_v15, %v856_v17 }
 0x5dc   : > { %v860_v19 = vadd.f32 %v859_v16, %v857_v18 }
 0x5de   : > { %v862_v20 = vsel %vm861_vm8, %v860_v19, -inf }
 0x5df   : > { %863 = vmax.xlane.f32.xlu0 %v862_v20 }
 0x66c   : > { %v864_v21 = vpop.xlane.xlu0 %863 }
 0x66d   : > { %v865_v22 = vsub.f32 %v860_v19, %v864_v21 }
 0x66f   : > { %v866_v23 = vmul.f32 1.442695, %v865_v22 }
 0x671   : > { %1173 = vpow2.f32 %v866_v23 }
 0x67b   : > { %v1174_v24 = vpop.eup %1173 }
 0x67c   : > { %v868_v25 = vsel %vm861_vm8, %v1174_v24, 0.0 }
 0x67d   : > { %869 = vadd.xlane.f32.xlu1 %v868_v25 }
 0x70a   : > { %v870_v28 = vpop.xlane.xlu1 %869 }
 0x70b   : > { %1175 = vrcp.f32 %v870_v28 }
 0x715   : > { %v1176_v29 = vpop.eup %1175 }
 0x716   : > { %v872_v30 = vmul.f32 %v1176_v29, %v1174_v24 }
 0x718   : > { %v873_v31 = vpack.c.bf16 %v872_v30, %v872_v30 }
 0x71a   : > { %1118 = vmatmul.mubr.msk.bf16.vlgmr.msra.gmra.mrb[0].mxu1 %vm861_vm8, %v873_v31 }
 0x7ed   : > { %v923_v33 = vpop.f32.mrb[0].mxu1 }
 0x7ee   : > { %v924_v34 = vadd.f32 %v1026_v32, %v923_v33  ;;  %v1119_v35 = vpop.f32.mrb[1].mxu1 }
 0x7ef   : > { %v926_v36 = vpop.f32.mrb[2].mxu1 }
 0x7f0   : > { %929 = vst [vmem:[%s1394_s10] sm:$0xff] %v924_v34  ;;  %v1120_v37 = vpop.f32.mrb[3].mxu1 }
 0x7f1 PF: > { %s20_s15 = sadd.s32 1, %s1199_s15   ;;  %s1395_s13 = smov %s1195_s14 }
 0x7f2   : > { %p17_p8 = scmp.ge.s32.totalorder %s20_s15, 4   ;;  %s1396_s14 = smov %s1398_s16 }
 0x7f4   :  { %19 = sbr.rel (!%p17_p8) target bundleno = 2 (0x2), region = 109 }

</bundles_post_ra>
